<compile_context>
chip_gen: v7x
topology: tpu7x:2x2x1
jax: 0.10.0
libtpu: 0.0.40
codegen_flags: <defaults>
</compile_context>

<pallas_src>
import jax
import jax.numpy as jnp
from jax.experimental import pallas as pl
from jax.experimental.pallas import tpu as pltpu

_LANE = 1024             # lane-dense slab width (multiple of 128) -> unmasked vst
_ROW_ALIGN = 32          # sublane alignment; 32 covers int8 native (32,128) tiling
_MAX_TILE_ROWS = 1024    # 1024x1024 f32 block = 4 MiB per input buffer
_TARGET_STEPS = 4        # >= 2 grid steps per TensorCore on v7x megacore
_VMEM_BUDGET = 12 << 20  # double-buffered footprint budget (under v5e's 16 MiB default)
_MIN_PALLAS_ELEMS = 1 << 16   # below this, fused XLA beats pallas_call launch cost


def _predicate(x):
    """x < -2 computed in the input dtype (no float promotion for int inputs)."""
    if jnp.issubdtype(x.dtype, jnp.unsignedinteger):
        return jnp.zeros(x.shape, dtype=jnp.bool_)     # never true for unsigned
    return x < jnp.asarray(-2, dtype=x.dtype)


def _threshold_kernel(x_ref, o_ref):
    # 1 where x < -2 else 0; cast straight to the output dtype (no extra pass).
    o_ref[...] = _predicate(x_ref[...]).astype(o_ref.dtype)


def _round_up(n, m):
    return ((n + m - 1) // m) * m


def _pick_tile_rows(rows, in_bytes, out_bytes):
    if rows <= _ROW_ALIGN:
        return rows                        # single full-extent block
    # Largest tile that (a) keeps the double-buffered footprint under budget and
    # (b) still yields >= _TARGET_STEPS grid steps so the pipeline hits steady state.
    vmem_cap = _VMEM_BUDGET // (2 * _LANE * (in_bytes + out_bytes))
    max_rows = min(_MAX_TILE_ROWS,
                   max(_ROW_ALIGN, (vmem_cap // _ROW_ALIGN) * _ROW_ALIGN))
    return min(max_rows, _round_up(pl.cdiv(rows, _TARGET_STEPS), _ROW_ALIGN))


def _threshold_slab(x2d, out_dtype):
    rows = x2d.shape[0]
    tile_r = _pick_tile_rows(rows, x2d.dtype.itemsize, jnp.dtype(out_dtype).itemsize)
    grid_rows = pl.cdiv(rows, tile_r)      # ragged last block is masked by Pallas
    return pl.pallas_call(
        _threshold_kernel,
        out_shape=jax.ShapeDtypeStruct((rows, _LANE), out_dtype),
        grid=(grid_rows,),
        in_specs=[pl.BlockSpec((tile_r, _LANE), lambda i: (i, 0))],
        out_specs=pl.BlockSpec((tile_r, _LANE), lambda i: (i, 0)),
        compiler_params=pltpu.CompilerParams(
            dimension_semantics=("parallel",),
        ),
    )(x2d)


def base_net_forward(x, *, out_dtype=jnp.int8,
                     min_pallas_elements=_MIN_PALLAS_ELEMS):
    """out = (x < -2) ? 1 : 0, elementwise. Returns `out_dtype` (default int8)."""
    orig_shape = x.shape
    total = x.size

    # Tiny inputs: the fixed pallas_call cost dominates; let XLA fuse the op.
    if total == 0 or total < min_pallas_elements:
        return _predicate(x).astype(out_dtype)

    x_flat = x.reshape(-1)                 # zero-copy for contiguous inputs
    tail = total % _LANE

    if tail == 0:
        # Fully zero-copy path: no pad, no output slice; rows may be ragged with
        # respect to the tile (Pallas masks the partial last block).
        rows = total // _LANE
        out2d = _threshold_slab(x_flat.reshape(rows, _LANE), out_dtype)
        return out2d.reshape(orig_shape)

    # Ragged-tail path: pad only to the next _LANE boundary (< 1024 elements) and
    # slice the tail off the narrow integer output.  The pad value is irrelevant
    # for correctness because the padded lanes are sliced off below.
    pad = _LANE - tail
    rows = (total + pad) // _LANE
    x2d = jnp.pad(x_flat, (0, pad)).reshape(rows, _LANE)
    out2d = _threshold_slab(x2d, out_dtype)
    return out2d.reshape(-1)[:total].reshape(orig_shape)


if __name__ == "__main__":
    key = jax.random.PRNGKey(0)
    k0, k1, k2 = jax.random.split(key, 3)

    # Small NCHW demo input (2048 elems = 2 lane rows), forced through Pallas.
    x_small = jax.random.normal(k0, (2, 4, 16, 16), dtype=jnp.float32) * 3.0
    out_small = jax.block_until_ready(
        base_net_forward(x_small, min_pallas_elements=0))
    assert out_small.shape == x_small.shape
    assert out_small.dtype == jnp.dtype(jnp.int8)
    assert bool(jnp.all(out_small == (x_small < -2.0).astype(jnp.int8)))

    # Larger input: zero-copy slab, 4 grid steps (multi-block pipelined path).
    x_big = jax.random.normal(k1, (2, 4, 128, 128), dtype=jnp.float32) * 3.0
    out_big = jax.block_until_ready(
        base_net_forward(x_big, min_pallas_elements=0))
    assert bool(jnp.all(out_big == (x_big < -2.0).astype(jnp.int8)))

    # rows (=40) not divisible by the tile -> ragged last grid block (masked writes).
    x_rr = jax.random.normal(k2, (40, 1024), dtype=jnp.float32) * 3.0
    out_rr = jax.block_until_ready(
        base_net_forward(x_rr, min_pallas_elements=0))
    assert bool(jnp.all(out_rr == (x_rr < -2.0).astype(jnp.int8)))

    # Size not a multiple of 1024 -> lane-tail path; also exercise int32 output.
    x_tail = jax.random.normal(k0, (3, 5, 17, 13), dtype=jnp.float32) * 3.0
    out_tail = jax.block_until_ready(
        base_net_forward(x_tail, out_dtype=jnp.int32, min_pallas_elements=0))
    assert out_tail.dtype == jnp.dtype(jnp.int32)
    assert bool(jnp.all(out_tail == (x_tail < -2.0).astype(jnp.int32)))

    print("KERNEL_OK")
</pallas_src>

<mosaic_0001>
module attributes {stable_mosaic.version = 11 : i64} {
  func.func @_threshold_kernel(%arg0: i32, %arg1: memref<2x1024xf32, #tpu.memory_space<vmem>>, %arg2: memref<2x1024xi8, #tpu.memory_space<vmem>>) attributes {dimension_semantics = [#tpu.dimension_semantics<parallel>], iteration_bounds = array<i64: 1>, scalar_prefetch = 0 : i64, scratch_operands = 0 : i64, tpu.core_type = #tpu.core_type<tc>, window_params = [{transform_indices = @transform_0, window_bounds = array<i64: 2, 1024>}, {transform_indices = @transform_1, window_bounds = array<i64: 2, 1024>}]} {
    %c0 = arith.constant 0 : index
    %c0_0 = arith.constant 0 : index
    %0 = vector.load %arg1[%c0, %c0_0] : memref<2x1024xf32, #tpu.memory_space<vmem>>, vector<2x1024xf32>
    %cst = arith.constant -2.000000e+00 : f32
    %1 = vector.broadcast %cst : f32 to vector<2x1024xf32>
    %2 = arith.cmpf olt, %0, %1 : vector<2x1024xf32>
    %3 = arith.extui %2 : vector<2x1024xi1> to vector<2x1024xi8>
    %c0_1 = arith.constant 0 : index
    %c0_2 = arith.constant 0 : index
    %4 = vector.load %arg2[%c0_1, %c0_2] : memref<2x1024xi8, #tpu.memory_space<vmem>>, vector<2x1024xi8>
    tpu.vector_store %arg2[%c0_1, %c0_2], %3 {strides = array<i32>} : memref<2x1024xi8, #tpu.memory_space<vmem>>, vector<2x1024xi8>,
    return
  }
  func.func @transform_0(%arg0: i32) -> (i32, i32) {
    %c0_i32 = arith.constant 0 : i32
    %c0_i32_0 = arith.constant 0 : i32
    return %arg0, %c0_i32 : i32, i32
  }
  func.func @transform_1(%arg0: i32) -> (i32, i32) {
    %c0_i32 = arith.constant 0 : i32
    %c0_i32_0 = arith.constant 0 : i32
    return %arg0, %c0_i32 : i32, i32
  }
}

</mosaic_0001>

<bundles_post_ra>
// kernel: tpu_custom_call.1
= control target key start
LH: loop header
LB: loop body
LE: loop exit
PB: predicated region body
PF: predicated region fallthrough
CT: control target
= control target key end

     0   :  { %6 = vsyncpa [#allocation3], 0  ;;  %s402_s0 = inlined_call_operand.hbm [shape: f32[2,1024], index: 0, kind: input, shape index: {}]   ;;  %s403_s1 = inlined_call_operand.hbm [shape: s8[2,1024], index: 1, kind: output, shape index: {}]  }
   0x1   :  { %7 = vsyncpa [#allocation4], 0  ;;  %s288_s6 = smov [#allocation2]   ;;  %s240_s10 = scalar_lea.hbm %s402_s0, 256 }
   0x2   :  { %s14_s7 = sshll.u32 %s288_s6, 4  ;;  %p241_p0 = scmp.ne.s32.totalorder %s402_s0, %s240_s10  ;;  %s15_s7 = int_to_ptr.vmem [resolvable:$true] %s14_s7 }
   0x3   :  { %p244_p1 = scmp.lt.u32.totalorder %s240_s10, %s402_s0 }
   0x5   :  { %p246_p2 = pnand %p244_p1, %p241_p0 }
   0x7   :  { %249 = shalt.err (!%p246_p2)
}
   0x8   :  { %s250_s15 = scalar_lea.vmem %s15_s7, 256  ;;  %p255_p4 = scmp.lt.s32.totalorder %s15_s7, %s15_s7 }
   0x9   :  { %p251_p3 = scmp.ne.s32.totalorder %s15_s7, %s250_s15  ;;  %p256_p5 = scmp.lt.s32.totalorder %s250_s15, %s250_s15 }
   0xb   :  { %p257_p6 = por %p256_p5, %p255_p4 }
   0xd   :  { %p258_p7 = pnand %p257_p6, %p251_p3 }
   0xf   :  { %261 = shalt.err (!%p258_p7)
}
  0x10   :  { %17 = dma.hbm_to_vmem [thread:$0]  %s402_s0, 256, %s15_s7, [#allocation3]  }
  0x11   :  { %284 = dma.done.wait [#allocation3], 256  }
  0x12   :  { %285 = vsyncadd [#allocation3], 4294967040  ;;  %v33_v0 = vlaneseq  ;;  %v289_v1 = vmov 1983009808   ;;  %v23_v6 = vld [vmem:[#allocation2] sm:$0xff]  ;;  %v24_v7 = vld [vmem:[#allocation2 + $0x8] sm:$0xff] }
  0x13   :  { %v31_v2 = vunpack.c.l.s4 %v289_v1  ;;  %vm25_vm0 = vcmp.lt.f32.partialorder %v23_v6, -2.0  ;;  %vm26_vm1 = vcmp.lt.f32.partialorder %v24_v7, -2.0  ;;  %vm186_vm2 = vcmask 1040384   ;;  %s292_s0 = smov [#allocation5]  }
  0x14   :  { %v34_v3 = vshrl.u32 %v33_v0, 7  ;;  %v290_v8 = vmov 0   ;;  %v291_v11 = vmov 1966171168   ;;  %vm187_vm3 = vsmask.f32 256 }
  0x15   :  { %v32_v4 = vunpack.c.0.s8 %v31_v2  ;;  %v27_v9 = vsel %vm25_vm0, 1, %v290_v8  ;;  %v28_v10 = vsel %vm26_vm1, 1, %v290_v8  ;;  %v74_v12 = vunpack.c.l.s4 %v291_v11  ;;  %vm320_vm8 = vmand %vm186_vm2, %vm187_vm3  ;;  %s226_s18 = sshll.u32 %s292_s0, 4  ;;  %s227_s18 = int_to_ptr.vmem [resolvable:$true] %s226_s18 }
  0x16   :  { %v29_v13 = vcombine.high %v27_v9, %v27_v9  ;;  %v44_v15 = vcombine.high %v28_v10, %v28_v10  ;;  %vm189_vm4 = vcmask 1041409   ;;  %vm190_vm5 = vsmask.f32 1280  ;;  %s262_s19 = scalar_lea.vmem %s227_s18, 128  ;;  %p267_p9 = scmp.lt.s32.totalorder %s227_s18, %s227_s18 }
  0x17   :  { %v35_v5 = vsub.s32 %v32_v4, %v34_v3  ;;  %v75_v22 = vunpack.c.0.s8 %v74_v12  ;;  %vm324_vm11 = vmand %vm189_vm4, %vm190_vm5  ;;  %vm193_vm12 = vcmask 1042434   ;;  %vm194_vm13 = vsmask.f32 2304  ;;  %v217_v4 = vld [vmem:[#allocation5] sm:$0xff]  ;;  %p263_p8 = scmp.ne.s32.totalorder %s227_s18, %s262_s19  ;;  %p268_p10 = scmp.lt.s32.totalorder %s262_s19, %s262_s19 }
  0x18   :  { %vm192_vm14 = vmor %vm324_vm11, %vm320_vm8  ;;  %vm197_vm0 = vcmask 1043459   ;;  %vm198_vm1 = vsmask.f32 3328  ;;  %vm201_vm5 = vcmask 1044484   ;;  %vm205_vm8 = vcmask 1045509  }
  0x19   :  { %v36_v14 = vrot.slane %v27_v9, %v35_v5  ;;  %v51_v16 = vrot.slane %v28_v10, %v35_v5  ;;  %v43_v17 = vrot.slane %v29_v13, %v35_v5  ;;  %v58_v18 = vrot.slane %v44_v15, %v35_v5  ;;  %vm195_vm15 = vmand %vm193_vm12, %vm194_vm13  ;;  %p269_p11 = por %p268_p10, %p267_p9 }
  0x1a   :  { %v334_v29 = vsub.s32 %v75_v22, %v34_v3  ;;  %vm337_vm3 = vmor %vm195_vm15, %vm192_vm14  ;;  %vm206_vm11 = vsmask.f32 5376  ;;  %vm210_vm13 = vsmask.f32 6400 }
  0x1b   :  { %vm59_vm6 = vcmp.ne.s32.totalorder %v36_v14, 0  ;;  %vm61_vm7 = vcmp.ne.s32.totalorder %v51_v16, 0  ;;  %vm60_vm9 = vcmp.ne.s32.totalorder %v43_v17, 0  ;;  %vm62_vm10 = vcmp.ne.s32.totalorder %v58_v18, 0  ;;  %vm342_vm4 = vmand %vm197_vm0, %vm198_vm1  ;;  %p270_p12 = pnand %p269_p11, %p263_p8 }
  0x1c   :  { %v63_v19 = vsel %vm59_vm6, 1, %v290_v8  ;;  %v65_v20 = vsel %vm61_vm7, 1, %v290_v8  ;;  %v64_v24 = vsel %vm60_vm9, 1, %v290_v8  ;;  %v66_v25 = vsel %vm62_vm10, 1, %v290_v8  ;;  %vm200_vm7 = vmor %vm342_vm4, %vm337_vm3 }
  0x1d   :  { %v67_v26 = vpack.c.b16 %v64_v24, %v63_v19  ;;  %v68_v27 = vpack.c.b16 %v66_v25, %v65_v20  ;;  %vm202_vm6 = vsmask.f32 4352  ;;  %vm368_vm12 = vmand %vm205_vm8, %vm206_vm11 }
  0x1e   :  { %vm203_vm9 = vmand %vm201_vm5, %vm202_vm6 }
  0x1f   :  { %v69_v28 = vpack.c.b8 %v68_v27, %v67_v26  ;;  %vm362_vm1 = vmor %vm203_vm9, %vm200_vm7  ;;  %vm416_vm7 = vcmask 1046534   ;;  %vm213_vm9 = vcmask 1047559  }
  0x20   :  { %vm208_vm4 = vmor %vm368_vm12, %vm362_vm1 }
  0x21   :  { %vm70_vm2 = vnez %v69_v28  ;;  %vm211_vm8 = vmand %vm416_vm7, %vm210_vm13 }
  0x22   :  { %v71_v30 = vsel %vm70_vm2, 16843009, %v290_v8  ;;  %vm212_vm11 = vmor %vm211_vm8, %vm208_vm4 }
  0x23   :  { %v72_v32 = vcombine.high %v71_v30, %v71_v30  ;;  %v79_v33 = vrot.slane %v71_v30, %v334_v29 }
  0x25   :  { %v86_v35 = vrot.slane %v72_v32, %v334_v29  ;;  %v87_v36 = vcombine.high %v79_v33, %v79_v33  ;;  %v95_v37 = vrot.slane %v79_v33, %v334_v29 }
  0x27   :  { %v88_v38 = vcombine.high %v86_v35, %v86_v35  ;;  %v102_v39 = vrot.slane %v86_v35, %v334_v29  ;;  %v109_v40 = vrot.slane %v87_v36, %v334_v29  ;;  %v117_v41 = vcombine.high %v95_v37, %v95_v37 }
  0x28   :  { %vm121_vm10 = vnez %v95_v37 }
  0x29   :  { %v116_v42 = vrot.slane %v88_v38, %v334_v29  ;;  %v118_v43 = vcombine.high %v102_v39, %v102_v39  ;;  %v119_v44 = vcombine.high %v109_v40, %v109_v40  ;;  %vm122_vm14 = vnez %v109_v40 }
  0x2a   :  { %vm123_vm15 = vnez %v117_v41  ;;  %vm125_vm0 = vnez %v102_v39  ;;  %v129_v45 = vsel %vm121_vm10, 16843009, %v290_v8  ;;  %v130_v46 = vsel %vm122_vm14, 16843009, %v290_v8 }
  0x2b   :  { %v120_v48 = vcombine.high %v116_v42, %v116_v42  ;;  %vm124_vm2 = vnez %v119_v44  ;;  %vm126_vm5 = vnez %v116_v42  ;;  %vm127_vm6 = vnez %v118_v43 }
  0x2c   :  { %v131_v50 = vsel %vm123_vm15, 16843009, %v290_v8  ;;  %v132_v51 = vsel %vm124_vm2, 16843009, %v290_v8  ;;  %v133_v52 = vsel %vm125_vm0, 16843009, %v290_v8  ;;  %v137_v53 = vcombine.low %v129_v45, %v130_v46 }
  0x2d   :  { %vm128_vm3 = vnez %v120_v48  ;;  %v134_v54 = vsel %vm126_vm5, 16843009, %v290_v8  ;;  %v135_v55 = vsel %vm127_vm6, 16843009, %v290_v8  ;;  %v138_v56 = vcombine.low %v131_v50, %v132_v51 }
  0x2e   :  { %v136_v57 = vsel %vm128_vm3, 16843009, %v290_v8  ;;  %v139_v58 = vcombine.low %v133_v52, %v134_v54  ;;  %v147_v59 = vrot.slane %v137_v53, %v334_v29  ;;  %vm214_vm10 = vsmask.f32 7424 }
  0x2f   :  { %v140_v60 = vcombine.low %v135_v55, %v136_v57  ;;  %v154_v61 = vrot.slane %v138_v56, %v334_v29  ;;  %vm215_vm14 = vmand %vm213_vm9, %vm214_vm10 }
  0x30   :  { %v161_v62 = vrot.slane %v139_v58, %v334_v29  ;;  %vm216_vm12 = vmor %vm215_vm14, %vm212_vm11 }
  0x31   :  { %v168_v63 = vrot.slane %v140_v60, %v334_v29  ;;  %v169_v0 = vcombine.low %v147_v59, %v154_v61 }
  0x33   :  { %v170_v1 = vcombine.low %v161_v62, %v168_v63  ;;  %v177_v2 = vrot.slane %v169_v0, %v334_v29 }
  0x35   :  { %v184_v3 = vrot.slane %v170_v1, %v334_v29 }
  0x37   :  { %v185_v5 = vcombine.low %v177_v2, %v184_v3 }
  0x39   :  { %v218_v6 = vsel %vm216_vm12, %v185_v5, %v217_v4 }
  0x3a   :  { %219 = vst [vmem:[#allocation5] sm:$0xff] %v218_v6 }
  0x3b   :  { %273 = shalt.err (!%p270_p12)
}
  0x3c   :  { %s274_s22 = scalar_lea.hbm %s403_s1, 128 }
  0x3d   :  { %p275_p13 = scmp.ne.s32.totalorder %s403_s1, %s274_s22  ;;  %p278_p0 = scmp.lt.u32.totalorder %s274_s22, %s403_s1 }
  0x3f   :  { %p280_p1 = pnand %p278_p0, %p275_p13 }
  0x41   :  { %283 = shalt.err (!%p280_p1)
}
  0x42   :  { %229 = dma.vmem_to_hbm [thread:$0]  %s227_s18, 128, %s403_s1, [#allocation4]  }
  0x43   :  { %286 = dma.done.wait [#allocation4], 128  }
  0x44   :  { %287 = vsyncadd [#allocation4], 4294967168 }
  0x45   :  { %233 = vsyncpa [#allocation3], 1 }
  0x46   :  { %234 = vsyncpa [#allocation4], 1 }

</bundles_post_ra>
